<compile_context>
chip_gen: v7x
topology: tpu7x:2x2x1
jax: 0.10.0
libtpu: 0.0.40
codegen_flags: <defaults>
</compile_context>

<pallas_src>
import math
import functools

import jax
import jax.numpy as jnp
from jax.experimental import pallas as pl
from jax.experimental.pallas import tpu as pltpu


def _wscale_kernel(scale_ref, bias_ref, x_ref, o_ref, *, row_tile):
    # scale_ref: SMEM (1, 1) f32 scalar
    # bias_ref:  VMEM (R_pad, 1) f32, whole array resident (no per-step DMA)
    # x_ref:     VMEM (row_tile, col_tile) tile of the flattened activation
    # o_ref:     VMEM (row_tile, col_tile) output tile
    i = pl.program_id(0)
    r0 = pl.multiple_of(i * row_tile, row_tile)
    b = bias_ref[pl.ds(r0, row_tile), :]                      # (row_tile, 1) f32
    y = x_ref[...].astype(jnp.float32) * scale_ref[0, 0] + b  # f32 compute
    o_ref[...] = y.astype(o_ref.dtype)


def _pick_tiles(R, HW, itemsize):
    """Pick (row_tile, col_tile) for the (R, HW) elementwise slab.

    Rules:
      * last block dim: multiple of 128 (lane-dense stores) or the full HW;
      * second-to-last: multiple of the sublane packing (8 f32 / 16 bf16 /
        32 int8) or the full R;
      * ~4 MiB per tile so per-step overhead is amortized while the pipelined
        footprint (2 in + 2 out buffers + bias) stays well under v7x's 64 MiB;
      * keep >= 2 grid steps where possible (v7x dual TensorCore).
    """
    LANE = 128
    row_align = max(8, 32 // itemsize)
    TARGET_TILE_BYTES = 4 * 1024 * 1024

    # Columns (lanes).
    if HW % LANE == 0:
        col_tile = min(HW, 4096)          # lane-dense, multiple of 128
    else:
        # TODO(synk): lane-sparse spatial maps (H*W % 128 != 0, e.g. 4x4 GAN
        # stages) fall back to masked stores; merging channels into lanes would
        # fix this but complicates the per-channel bias broadcast.
        col_tile = HW

    # Rows (sublanes).
    if R <= row_align:
        row_tile = R
    else:
        rows_fit = max(row_align, TARGET_TILE_BYTES // max(1, col_tile * itemsize))
        row_tile = min((rows_fit // row_align) * row_align,
                       ((R + row_align - 1) // row_align) * row_align)
        row_tile = max(row_tile, row_align)

    # Ensure at least 2 grid steps when the shape allows (v7x megacore).
    grid_r = -(-R // row_tile)
    grid_c = -(-HW // col_tile)
    if grid_r * grid_c < 2:
        if R >= 2 * row_align:
            row_tile = max(row_align, ((R // 2) // row_align) * row_align)
        elif col_tile % (2 * LANE) == 0:
            col_tile //= 2

    return row_tile, col_tile


@functools.partial(jax.jit, static_argnames=("row_tile", "col_tile", "donate_x"))
def wscale_forward(x, bias, scale, *, row_tile=None, col_tile=None, donate_x=False):
    """x: (N, C, H, W); bias: (C,); scale: () -> y = x * scale + bias[None,:,None,None]."""
    N, C, H, W = x.shape
    R, HW = N * C, H * W
    itemsize = jnp.dtype(x.dtype).itemsize

    auto_rt, auto_ct = _pick_tiles(R, HW, itemsize)
    rt = auto_rt if row_tile is None else row_tile
    ct = auto_ct if col_tile is None else col_tile

    grid_r = pl.cdiv(R, rt)
    grid_c = pl.cdiv(HW, ct)
    R_pad = grid_r * rt                     # pad bias so in-kernel pl.ds never reads OOB

    # Glue: flatten to (N*C, H*W); per-row bias (row i -> bias[i % C]).
    # bias_rows is only N*C f32 values -> negligible HBM traffic per call.
    x2d = x.reshape(R, HW)
    bias_rows = jnp.tile(bias.astype(jnp.float32), (N,)).reshape(R, 1)
    if R_pad > R:
        bias_rows = jnp.pad(bias_rows, ((0, R_pad - R), (0, 0)))
    scale_smem = jnp.asarray(scale, jnp.float32).reshape(1, 1)

    kernel = functools.partial(_wscale_kernel, row_tile=rt)

    out2d = pl.pallas_call(
        kernel,
        out_shape=jax.ShapeDtypeStruct((R, HW), x.dtype),
        grid_spec=pltpu.PrefetchScalarGridSpec(
            num_scalar_prefetch=0,
            grid=(grid_r, grid_c),
            in_specs=[
                pl.BlockSpec(memory_space=pltpu.SMEM),              # scale scalar
                pl.BlockSpec(memory_space=pltpu.VMEM),              # bias rows (resident)
                pl.BlockSpec((rt, ct), lambda i, j: (i, j)),        # x tile
            ],
            out_specs=pl.BlockSpec((rt, ct), lambda i, j: (i, j)),  # lane-dense output
        ),
        compiler_params=pltpu.CompilerParams(
            dimension_semantics=("parallel", "parallel"),
            # Raise the scoped-VMEM limit (defaults: 16 MiB v5e / 32 MiB v6e,v7x)
            # so the ~4 MiB double-buffered tiles fit; designed footprint stays
            # ~<40 MiB, safe for v7x's 64 MiB physical VMEM.
            vmem_limit_bytes=64 * 1024 * 1024,
        ),
        # Optional in-place update of the activation (input index 2 = x2d).
        input_output_aliases=({2: 0} if donate_x else {}),
    )(scale_smem, bias_rows, x2d)

    return out2d.reshape(N, C, H, W)


if __name__ == "__main__":
    # Synthetic "incoming" layer: Conv2d(in_channels=3, out_channels=4, kernel=3x3).
    # fan_in ('fan_in' for conv weight) = in_channels * kH * kW = 27
    # gain for 'relu' = sqrt(2); scale = gain / sqrt(fan_in)
    in_channels, out_channels, kh, kw = 3, 4, 3, 3
    fan_in = in_channels * kh * kw
    gain = math.sqrt(2.0)
    scale = jnp.float32(gain / math.sqrt(fan_in))

    key = jax.random.PRNGKey(0)
    kx, kb = jax.random.split(key)

    # x is the output of the incoming conv, so its channel dim = out_channels.
    N, C, H, W = 2, out_channels, 16, 16
    x = jax.random.normal(kx, (N, C, H, W), dtype=jnp.float32)
    bias = jax.random.normal(kb, (C,), dtype=jnp.float32)    # incoming.bias, moved here

    # f32 path.
    y = wscale_forward(x, bias, scale)
    jax.block_until_ready(y)
    y_ref = x * scale + bias.reshape(1, C, 1, 1)
    assert y.shape == x.shape and y.dtype == x.dtype
    assert jnp.allclose(y, y_ref, atol=1e-6, rtol=1e-6)

    # bf16 path (bandwidth-bound op: halving activation bytes halves HBM traffic).
    xb = x.astype(jnp.bfloat16)
    yb = wscale_forward(xb, bias, scale)
    jax.block_until_ready(yb)
    yb_ref = (xb.astype(jnp.float32) * scale + bias.reshape(1, C, 1, 1)).astype(jnp.bfloat16)
    assert yb.dtype == jnp.bfloat16
    assert jnp.allclose(yb.astype(jnp.float32), yb_ref.astype(jnp.float32),
                        atol=2e-2, rtol=2e-2)

    print("KERNEL_OK")
</pallas_src>

<mosaic_0001>
module attributes {stable_mosaic.version = 11 : i64} {
  func.func @_wscale_kernel(%arg0: i32, %arg1: i32, %arg2: memref<1x1xf32, #tpu.memory_space<smem>>, %arg3: memref<8x1xf32, #tpu.memory_space<vmem>>, %arg4: memref<8x128xf32, #tpu.memory_space<vmem>>, %arg5: memref<8x128xf32, #tpu.memory_space<vmem>>) attributes {dimension_semantics = [#tpu.dimension_semantics<parallel>, #tpu.dimension_semantics<parallel>], iteration_bounds = array<i64: 1, 2>, scalar_prefetch = 0 : i64, scratch_operands = 0 : i64, tpu.core_type = #tpu.core_type<tc>, window_params = [{transform_indices = @transform_0, window_bounds = array<i64: 1, 1>}, {pipeline_mode = #tpu.pipeline_mode<synchronous>, transform_indices = @transform_1, window_bounds = array<i64: 8, 1>}, {transform_indices = @transform_2, window_bounds = array<i64: 8, 128>}, {transform_indices = @transform_3, window_bounds = array<i64: 8, 128>}]} {
    %c8_i32 = arith.constant 8 : i32
    %0 = arith.muli %arg0, %c8_i32 : i32
    %1 = tpu.assume_multiple %0, 8 : i32
    %2 = arith.index_cast %1 : i32 to index
    %c0 = arith.constant 0 : index
    %3 = vector.load %arg3[%2, %c0] : memref<8x1xf32, #tpu.memory_space<vmem>>, vector<8x1xf32>
    %c0_0 = arith.constant 0 : index
    %c0_1 = arith.constant 0 : index
    %4 = vector.load %arg4[%c0_0, %c0_1] : memref<8x128xf32, #tpu.memory_space<vmem>>, vector<8x128xf32>
    %c0_2 = arith.constant 0 : index
    %c0_3 = arith.constant 0 : index
    %5 = memref.load %arg2[%c0_2, %c0_3] : memref<1x1xf32, #tpu.memory_space<smem>>
    %6 = vector.broadcast %5 : f32 to vector<8x128xf32>
    %7 = arith.mulf %4, %6 : vector<8x128xf32>
    %8 = vector.broadcast %3 : vector<8x1xf32> to vector<8x128xf32>
    %9 = arith.addf %7, %8 : vector<8x128xf32>
    %c0_4 = arith.constant 0 : index
    %c0_5 = arith.constant 0 : index
    %10 = vector.load %arg5[%c0_4, %c0_5] : memref<8x128xf32, #tpu.memory_space<vmem>>, vector<8x128xf32>
    tpu.vector_store %arg5[%c0_4, %c0_5], %9 {strides = array<i32>} : memref<8x128xf32, #tpu.memory_space<vmem>>, vector<8x128xf32>,
    return
  }
  func.func @transform_0(%arg0: i32, %arg1: i32) -> (i32, i32) {
    %c0_i32 = arith.constant 0 : i32
    %c0_i32_0 = arith.constant 0 : i32
    %c0_i32_1 = arith.constant 0 : i32
    return %c0_i32, %c0_i32_0 : i32, i32
  }
  func.func @transform_1(%arg0: i32, %arg1: i32) -> (i32, i32) {
    %c0_i32 = arith.constant 0 : i32
    %c0_i32_0 = arith.constant 0 : i32
    %c0_i32_1 = arith.constant 0 : i32
    return %c0_i32, %c0_i32_0 : i32, i32
  }
  func.func @transform_2(%arg0: i32, %arg1: i32) -> (i32, i32) {
    %c0_i32 = arith.constant 0 : i32
    return %arg0, %arg1 : i32, i32
  }
  func.func @transform_3(%arg0: i32, %arg1: i32) -> (i32, i32) {
    %c0_i32 = arith.constant 0 : i32
    return %arg0, %arg1 : i32, i32
  }
}

</mosaic_0001>

<bundles_post_ra>
// kernel: tile.8
= control target key start
LH: loop header
LB: loop body
LE: loop exit
PB: predicated region body
PF: predicated region fallthrough
CT: control target
= control target key end

     0   :  { %s22_s0 = inlined_call_operand.vmem [shape: f32[4], index: 0, kind: input, shape index: {}]   ;;  %s23_s1 = inlined_call_operand.vmem [shape: f32[2,4], index: 1, kind: output, shape index: {}]  }
   0x1   :  { %v4_v0 = vld [vmem:[%s22_s0] ss:$0 sm:$0xff] }
   0x2   :  { %5 = vst [vmem:[%s23_s1] sm:$0x3] %v4_v0 }

// kernel: tile.0
= control target key start
LH: loop header
LB: loop body
LE: loop exit
PB: predicated region body
PF: predicated region fallthrough
CT: control target
= control target key end

     0   :  { %s95_s0 = inlined_call_operand.vmem [shape: f32[2,4], index: 0, kind: input, shape index: {}]   ;;  %s96_s1 = inlined_call_operand.hbm [shape: f32[8,1], index: 1, kind: output, shape index: {}]  }
   0x1   :  { %v5_v0 = vld [vmem:[%s95_s0] sm:$0x3] }
   0x2   :  { %6 = vst [vmem:[#allocation2] sm:$0x3] %v5_v0 }
   0x3   :  { %2 = vsyncpa [#allocation1], 0  ;;  %s66_s0 = smov 127   ;;  %s67_s8 = smov 125   ;;  %vm8_vm0 = vcmask 7168  }
   0x4   :  { %s68_s9 = smov 126   ;;  %s69_s10 = smov [#allocation0]  }
   0x5   :  { %s32_s11 = sshll.u32 %s69_s10, 4  ;;  %s33_s11 = int_to_ptr.vmem [resolvable:$true] %s32_s11 }
   0x6   :  { %s42_s12 = scalar_lea.vmem %s33_s11, 128  ;;  %p47_p1 = scmp.lt.s32.totalorder %s33_s11, %s33_s11 }
   0x7   :  { %p43_p0 = scmp.ne.s32.totalorder %s33_s11, %s42_s12  ;;  %p48_p2 = scmp.lt.s32.totalorder %s42_s12, %s42_s12 }
   0x9   :  { %v10_v1 = vld [vmem:[#allocation2] sm:$0x3]   ;;  %p49_p3 = por %p48_p2, %p47_p1 }
   0xa   :  { %v22_v2 = vld [vmem:[#allocation2] sm:$0x3]   ;;  %11 = vrot.lane.b32.xlu0 %v10_v1, %s66_s0 }
   0xb   :  { %23 = vrot.lane.b32.xlu1 %v22_v2, %s67_s8  ;;  %v7_v3 = vld [vmem:[#allocation2] sm:$0x3]   ;;  %p50_p4 = pnand %p49_p3, %p43_p0 }
   0xc   :  { %v16_v4 = vld [vmem:[#allocation2] sm:$0x3]   ;;  %9 = vst.msk [vmem:[#allocation0] ss:$4 sm:$0x3] %vm8_vm0, %v7_v3  }
   0xe   :  { %17 = vrot.lane.b32.xlu0 %v16_v4, %s68_s9 }
  0x7c   :  { %v12_v5 = vpop.permute.xlu0 %11  }
  0x7d   :  { %v24_v6 = vpop.permute.xlu1 %23   ;;  %15 = vst.msk [vmem:[#allocation0 + $0x1] ss:$4 sm:$0x3] %vm8_vm0, %v12_v5  }
  0x7e   :  { %27 = vst.msk [vmem:[#allocation0 + $0x3] ss:$4 sm:$0x3] %vm8_vm0, %v24_v6  }
  0x80   :  { %v18_v7 = vpop.permute.xlu0 %17  }
  0x81   :  { %21 = vst.msk [vmem:[#allocation0 + $0x2] ss:$4 sm:$0x3] %vm8_vm0, %v18_v7  }
  0x82   :  { %53 = shalt.err (!%p50_p4)
}
  0x83   :  { %s54_s15 = scalar_lea.hbm %s96_s1, 128 }
  0x84   :  { %p55_p5 = scmp.ne.s32.totalorder %s96_s1, %s54_s15  ;;  %p58_p6 = scmp.lt.u32.totalorder %s54_s15, %s96_s1 }
  0x86   :  { %p60_p7 = pnand %p58_p6, %p55_p5 }
  0x88   :  { %63 = shalt.err (!%p60_p7)
}
  0x89   :  { %35 = dma.vmem_to_hbm [thread:$0]  %s33_s11, 128, %s96_s1, [#allocation1]  }
  0x8a   :  { %64 = dma.done.wait [#allocation1], 128  }
  0x8b   :  { %65 = vsyncadd [#allocation1], 4294967168 }
  0x8c   :  { %37 = vsyncpa [#allocation1], 1 }

// kernel: wscale_forward.1
= control target key start
LH: loop header
LB: loop body
LE: loop exit
PB: predicated region body
PF: predicated region fallthrough
CT: control target
= control target key end

     0   :  { %s823_s0 = inlined_call_operand.<no memory space> [shape: f32[1,1], index: 0, kind: input, shape index: {}]   ;;  %s824_s1 = inlined_call_operand.hbm [shape: f32[8,1], index: 1, kind: input, shape index: {}]   ;;  %s825_s2 = inlined_call_operand.hbm [shape: f32[8,256], index: 2, kind: input, shape index: {}]   ;;  %s826_s3 = inlined_call_operand.hbm [shape: f32[8,256], index: 3, kind: output, shape index: {}]  }
   0x1   :  { %8 = sst [smem:[#allocation2]] %s823_s0 }
   0x2   :  { %9 = vsyncpa [#allocation4], 0 }
   0x3   :  { %10 = vsyncpa [#allocation7], 0 }
   0x4   :  { %12 = vsyncpa [#allocation7 + $0x1], 0 }
   0x5   :  { %13 = vsyncpa [#allocation5], 0 }
   0x6   :  { %15 = vsyncpa [#allocation5 + $0x1], 0  ;;  %s607_s14 = smov 0   ;;  %s609_s15 = smov 0  }
   0x7   :  { %s611_s16 = smov 0   ;;  %s613_s17 = smov 0  }
   0x8   :  { %s615_s18 = smov 0   ;;  %s617_s19 = smov 0  }
   0x9 LB: > { %s344_s0 = sadd.s32 4294967295, %s578_s19   ;;  %s345_s20 = sadd.s32 4294967294, %s578_s19   ;;  %s578_s19 = sphi %s617_s19, %s21_s19   ;;  %s574_s18 = sphi %s615_s18, %s851_s18   ;;  %s570_s17 = sphi %s613_s17, %s850_s17   ;;  %s566_s16 = sphi %s611_s16, %s849_s16   ;;  %s562_s15 = sphi %s609_s15, %s848_s15   ;;  %s558_s14 = sphi %s607_s14, %s847_s14  }
   0xa   : > { %p97_p0 = scmp.ne.s32.totalorder %s562_s15, %s558_s14  ;;  %p641_p1 = scmp.eq.s32.totalorder %s344_s0, 0 }
   0xb   : > { %p645_p2 = scmp.eq.s32.totalorder %s344_s0, 1  ;;  %p129_p3 = scmp.eq.s32.totalorder %s345_s20, 1 }
   0xc   : > { %s831_s21 = scalar_select %p641_p1, 1, 0 }
   0xd   : > { %s832_s22 = scalar_select %p645_p2, 1, 0 }
   0xe   : > { %p651_p4 = por %p641_p1, %p97_p0  ;;  %p346_p5 = scmp.ge.s32.totalorder %s578_s19, 1 }
   0xf   : > { %p656_p6 = por %p129_p3, %p97_p0  ;;  %p136_p7 = scmp.lt.s32.totalorder %s578_s19, 3 }
  0x10   : > { %s833_s23 = scalar_select %p651_p4, 1, 0 }
  0x11   : > { %s834_s24 = scalar_select %p656_p6, 1, 0 }
  0x12   : > { %p661_p8 = pnand %p346_p5, %p136_p7  ;;  %s580_s26 = smov [#allocation3]  }
  0x13   : > { %s152_s27 = sshll.u32 %s580_s26, 4  ;;  %s30_s29 = sadd.s32 1, %s574_s18  ;;  %s153_s27 = int_to_ptr.vmem [resolvable:$true] %s152_s27 }
  0x14   : > { %s835_s25 = scalar_select %p661_p8, 1, 0 }
  0x15   : > { %p367_p10 = pneg %p661_p8  ;;  %s84_s30 = sadd.s32 1, %s566_s16 }
  0x16   : > { %p676_p12 = scmp.ge.s32.totalorder %s30_s29, 2  ;;  %s434_s7 = scalar_lea.hbm %s824_s1, 128 }
  0x17   : > { %p670_p11 = pnand %p367_p10, %p641_p1  ;;  %p435_p13 = scmp.ne.s32.totalorder %s824_s1, %s434_s7 }
  0x18   : > { %s837_s4 = scalar_select %p676_p12, 1, 0 }
  0x19   : > { %p436_p0 = pneg %p670_p11  ;;  %p441_p7 = scmp.lt.u32.totalorder %s434_s7, %s824_s1 }
  0x1b   : > { %p437_p3 = pnand %p436_p0, %p435_p13 }
  0x1d   : > { %p438_p5 = pneg %p437_p3 }
  0x1f   : > { %p443_p10 = pnand %p441_p7, %p438_p5 }
  0x21   : > { %446 = shalt.err (!%p443_p10)
}
  0x22   : > { %s447_s12 = scalar_lea.vmem %s153_s27, 128  ;;  %p455_p1 = scmp.lt.s32.totalorder %s153_s27, %s153_s27 }
  0x23   : > { %p448_p9 = scmp.ne.s32.totalorder %s153_s27, %s447_s12  ;;  %p456_p8 = scmp.lt.s32.totalorder %s447_s12, %s447_s12 }
  0x25   : > { %p450_p6 = pnand %p448_p9, %p436_p0  ;;  %p457_p2 = por %p456_p8, %p455_p1 }
  0x27   : > { %p451_p4 = pneg %p450_p6 }
  0x29   : > { %p458_p12 = pnand %p457_p2, %p451_p4 }
  0x2b   : > { %461 = shalt.err (!%p458_p12)
}
  0x2c   : > { %370 = dma.hbm_to_vmem [thread:$0]  (!%p670_p11), %s824_s1, 128, %s153_s27, [#allocation4]  }
  0x2d   : > { %p838_p1 = scmp.ne.s32.totalorder %s837_s4, 0  ;;  %p91_p2 = scmp.ne.s32.totalorder %s566_s16, %s562_s15 }
  0x2e   : > { %p92_p4 = scmp.eq.s32.totalorder %s578_s19, 0  ;;  %p380_p6 = scmp.lt.s32.totalorder %s578_s19, 2 }
  0x2f   : > { %s853_s29 = smov (%p838_p1, %s30_s29), 0  ;;  %p839_p12 = scmp.ne.s32.totalorder %s832_s22, 0 }
  0x30   : > { %s80_s20 = ssub.s32 %s574_s18, %s853_s29  ;;  %p93_p9 = por %p92_p4, %p91_p2 }
  0x31   : > { %p82_p8 = scmp.eq.s32.totalorder %s80_s20, 0  ;;  %p708_p13 = por %p839_p12, %p91_p2 }
  0x32   : > { %s163_s28 = sand.u32 1, %s566_s16   ;;  %s350_s4 = sshll.u32 %s574_s18, 7 }
  0x33   : > { %s716_s5 = scalar_select %p82_p8, %s566_s16, %s84_s30  }
  0x34   : > { %s349_s27 = sshll.u32 %s163_s28, 3  ;;  %s722_s8 = scalar_lea.hbm %s825_s2, %s350_s4 }
  0x35   : > { %s167_s22 = scalar_lea.vmem [#allocation6], %s349_s27  ;;  %p726_p11 = pnand %p380_p6, %p93_p9 }
  0x36   : > { %s176_s9 = sshll.u32 %s167_s22, 4  ;;  %s164_s30 = scalar_lea.sflag [#allocation7], %s163_s28  ;;  %s724_s9 = int_to_ptr.vmem [resolvable:$true] %s176_s9 }
  0x37   : > { %s462_s11 = scalar_lea.hbm %s722_s8, 128  ;;  %p464_p3 = pneg %p726_p11 }
  0x38   : > { %p463_p0 = scmp.ne.s32.totalorder %s722_s8, %s462_s11  ;;  %s467_s0 = scalar_lea.hbm %s825_s2, 256 }
  0x39   : > { %p468_p10 = scmp.lt.u32.totalorder %s722_s8, %s825_s2  ;;  %p469_p1 = scmp.lt.u32.totalorder %s467_s0, %s462_s11 }
  0x3a   : > { %p465_p5 = pnand %p464_p3, %p463_p0  ;;  %p471_p4 = scmp.lt.u32.totalorder %s462_s11, %s722_s8 }
  0x3b   : > { %p470_p2 = por %p469_p1, %p468_p10 }
  0x3c   : > { %p466_p7 = pneg %p465_p5 }
  0x3d   : > { %p472_p6 = por %p471_p4, %p470_p2 }
  0x3f   : > { %p473_p8 = pnand %p472_p6, %p466_p7 }
  0x41   : > { %476 = shalt.err (!%p473_p8)
}
  0x42   : > { %s477_s28 = scalar_lea.vmem %s724_s9, 128  ;;  %s581_s4 = smov [#allocation6]  }
  0x43   : > { %p478_p9 = scmp.ne.s32.totalorder %s724_s9, %s477_s28  ;;  %s482_s6 = sshll.u32 %s581_s4, 4  ;;  %s483_s6 = int_to_ptr.vmem [resolvable:$false] %s482_s6 }
  0x44   : > { %s484_s7 = scalar_lea.vmem %s483_s6, 256  ;;  %p485_p5 = scmp.lt.s32.totalorder %s724_s9, %s483_s6 }
  0x45   : > { %p480_p12 = pnand %p478_p9, %p464_p3  ;;  %p486_p10 = scmp.lt.s32.totalorder %s484_s7, %s477_s28 }
  0x47   : > { %p481_p0 = pneg %p480_p12  ;;  %p487_p1 = por %p486_p10, %p485_p5 }
  0x49   : > { %p488_p2 = pnand %p487_p1, %p481_p0 }
  0x4b   : > { %491 = shalt.err (!%p488_p2)
}
  0x4c   : > { %374 = dma.hbm_to_vmem [thread:$0]  (!%p726_p11), %s722_s8, 128, %s724_s9, %s164_s30  }
  0x4d   : > { %p842_p7 = scmp.ne.s32.totalorder %s835_s25, 0 }
  0x4e   : > { %p843_p3 = scmp.ne.s32.totalorder (!%p842_p7), %s831_s21, 0 }
  0x4f   : > { %185 = sbr.rel (%p842_p7) target bundleno = 237 (0xed), region = 32 }
  0x56   : > { %545 = dma.done.wait (%p843_p3), [#allocation4], 128  }
  0x57   : > { %547 = vsyncadd (%p843_p3), [#allocation4], 4294967168  ;;  %s762_s22 = sand.u32 1, %s562_s15   ;;  %p844_p4 = scmp.ne.s32.totalorder %s833_s23, 0 }
  0x58   : > { %s353_s11 = sshll.u32 %s762_s22, 3  ;;  %s192_s10 = scalar_lea.sflag [#allocation7], %s762_s22 }
  0x59   : > { %s195_s12 = scalar_lea.vmem [#allocation6], %s353_s11 }
  0x5a   : > { %549 = dma.done.wait (%p844_p4), %s192_s10, 128  }
  0x5b   : > { %551 = vsyncadd (%p844_p4), %s192_s10, 4294967168  ;;  %v582_v0 = vmov 0   ;;  %v220_v1 = vld [vmem:[#allocation3] sm:$0xff]  ;;  %s222_s21 = sld [smem:[#allocation2]]  ;;  %v221_v2 = vld [vmem:[%s195_s12] sm:$0xff]  ;;  %s356_s25 = sshll.u32 %s570_s17, 7 }
  0x5c   : > { %433 = vset.pattern.permute.xlu0 %v582_v0  ;;  %s217_s8 = scalar_lea.vmem [#allocation8], %s353_s11  ;;  %s774_s23 = scalar_lea.hbm %s826_s3, %s356_s25 }
  0x5d   : > { %227 = vperm.xlu0 %433, %v220_v1   ;;  %s248_s9 = sshll.u32 %s217_s8, 4  ;;  %s233_s0 = scalar_lea.sflag [#allocation5], %s762_s22  ;;  %s776_s9 = int_to_ptr.vmem [resolvable:$true] %s248_s9 }
  0x5e   : > { %s492_s20 = scalar_lea.vmem %s776_s9, 128  ;;  %s583_s17 = smov [#allocation8]  }
  0x5f   : > { %p493_p11 = scmp.ne.s32.totalorder %s776_s9, %s492_s20  ;;  %s496_s27 = sshll.u32 %s583_s17, 4  ;;  %s497_s27 = int_to_ptr.vmem [resolvable:$false] %s496_s27 }
  0x60   : > { %s498_s28 = scalar_lea.vmem %s497_s27, 256  ;;  %p499_p9 = scmp.lt.s32.totalorder %s776_s9, %s497_s27 }
  0x61   : > { %v223_v3 = vstv %s222_s21  ;;  %p494_p6 = pnand %p493_p11, %p708_p13  ;;  %p500_p12 = scmp.lt.s32.totalorder %s498_s28, %s492_s20 }
  0x62   : > { %v224_v4 = vmul.f32 %v223_v3, %v221_v2 }
  0x63   : > { %p495_p8 = pneg %p494_p6  ;;  %p501_p0 = por %p500_p12, %p499_p9 }
  0x65   : > { %p502_p5 = pnand %p501_p0, %p495_p8 }
  0xdc   : > { %v228_v5 = vpop.permute.xlu0 %227 }
  0xdd   : > { %v230_v6 = vadd.f32 %v228_v5, %v224_v4 }
  0xdf   : > { %231 = vst [vmem:[%s217_s8] sm:$0xff] %v230_v6 }
  0xe0   : > { %505 = shalt.err (!%p502_p5)
}
  0xe1   : > { %s506_s4 = scalar_lea.hbm %s774_s23, 128  ;;  %s510_s22 = scalar_lea.hbm %s826_s3, 256 }
  0xe2   : > { %p507_p10 = scmp.ne.s32.totalorder %s774_s23, %s506_s4  ;;  %p511_p7 = scmp.lt.u32.totalorder %s774_s23, %s826_s3 }
  0xe3   : > { %p512_p3 = scmp.lt.u32.totalorder %s510_s22, %s506_s4  ;;  %p514_p11 = scmp.lt.u32.totalorder %s506_s4, %s774_s23 }
  0xe4   : > { %p508_p1 = pnand %p507_p10, %p708_p13 }
  0xe5   : > { %p513_p4 = por %p512_p3, %p511_p7 }
  0xe6   : > { %p509_p2 = pneg %p508_p1 }
  0xe7   : > { %p515_p6 = por %p514_p11, %p513_p4 }
  0xe9   : > { %p516_p8 = pnand %p515_p6, %p509_p2 }
  0xeb   : > { %519 = shalt.err (!%p516_p8)
}
  0xec   : > { %365 = dma.vmem_to_hbm [thread:$0]  (%p708_p13), %s776_s9, 128, %s774_s23, %s233_s0  }
  0xed PF: > { %s260_s12 = sand.u32 1, %s558_s14   ;;  %p845_p9 = scmp.ne.s32.totalorder %s834_s24, 0 }
  0xee   : > { %p846_p12 = scmp.ge.s32.totalorder %s578_s19, 2  ;;  %s261_s21 = scalar_lea.sflag [#allocation5], %s260_s12 }
  0xf0   : > { %p376_p0 = pnand %p846_p12, %p845_p9 }
  0xf2   : > { %553 = dma.done.wait (!%p376_p0), %s261_s21, 128  }
  0xf3   : > { %555 = vsyncadd (!%p376_p0), %s261_s21, 4294967168  ;;  %s21_s19 = sadd.s32 1, %s578_s19   ;;  %s847_s14 = smov %s562_s15 }
  0xf4   : > { %p18_p5 = scmp.ge.s32.totalorder %s21_s19, 4   ;;  %s848_s15 = smov %s566_s16 }
  0xf5   : > { %s849_s16 = smov %s716_s5  ;;  %s850_s17 = smov %s574_s18 }
  0xf6   : > { %s851_s18 = smov %s853_s29  ;;  %20 = sbr.rel (!%p18_p5) target bundleno = 9 (0x9), region = 83 }
  0xfd   :  { %266 = vsyncpa [#allocation4], 1 }
  0xfe   :  { %268 = vsyncpa [#allocation4 + $0x1], 1 }
  0xff   :  { %269 = vsyncpa [#allocation7], 1 }
 0x100   :  { %271 = vsyncpa [#allocation7 + $0x1], 1 }
 0x101   :  { %272 = vsyncpa [#allocation5], 1 }
 0x102   :  { %274 = vsyncpa [#allocation5 + $0x1], 1 }

</bundles_post_ra>
